<compile_context>
chip_gen: v6e
topology: v6e:2x2x1
jax: 0.10.0
libtpu: 0.0.40
codegen_flags: <defaults>
</compile_context>

<pallas_src>
import functools

import jax
import jax.numpy as jnp
from jax.experimental import pallas as pl
from jax.experimental.pallas import tpu as pltpu


def _trunc_ce_kernel(logits_ref, targets_ref, loss_ref, w0_ref, *,
                     loss_trunc_thr, decay, ignore_index, n_rows):
    """One (TILE_N, C) block -> per-block partial sums (lane-dense output row)."""
    pid = pl.program_id(0)
    tn, c = logits_ref.shape

    x = logits_ref[...].astype(jnp.float32)          # (tn, c) in-VMEM upcast
    t = targets_ref[...]                             # (tn, 1) int32

    # Last grid block may overrun N (no wrapper-side pad): mask garbage rows.
    row_ids = jax.lax.broadcasted_iota(jnp.int32, (tn, 1), 0) + pid * tn
    valid = row_ids < n_rows                         # (tn, 1) bool

    class_ids = jax.lax.broadcasted_iota(jnp.int32, (tn, c), 1)

    # numerically stable row statistics; xm reused for exp and one-hot gather
    m = jnp.max(x, axis=1, keepdims=True)            # (tn, 1)
    xm = x - m                                       # (tn, c)
    e = jnp.exp(xm)                                  # (tn, c)
    s = jnp.sum(e, axis=1, keepdims=True)            # (tn, 1)

    # per-sample CE = log(s) - xm[t]  (log-softmax never materialized);
    # masked tail rows / ignored rows contribute an exact 0 (kills NaN*0 too).
    xm_t = jnp.sum(jnp.where(class_ids == t, xm, 0.0), axis=1, keepdims=True)
    keep = valid & (t > ignore_index)
    ce = jnp.where(keep, jnp.log(s) - xm_t, 0.0)     # (tn, 1)

    # truncation test on x with one (tn, 1) exp:
    #   softmax(x)[:, 1:].max() > thr   <=>   exp(max_{c>=1} x - m) > thr * s
    x_fg = jnp.max(jnp.where(class_ids >= 1, x, -jnp.inf), axis=1, keepdims=True)
    trunc = (jnp.exp(x_fg - m) > loss_trunc_thr * s) & (t == 0) & valid

    w0 = keep.astype(jnp.float32)                    # pre-decay weights (normalizer)
    w = jnp.where(trunc, jnp.float32(decay), w0)

    # per-block partials, broadcast to 128 lanes -> unmasked lane-dense store
    loss_ref[...] = jnp.broadcast_to(jnp.sum(ce * w), loss_ref.shape)
    w0_ref[...] = jnp.broadcast_to(jnp.sum(w0), w0_ref.shape)


def _round_up(x, m):
    return ((x + m - 1) // m) * m


def _pick_tile_n(n, c, in_itemsize):
    lanes = _round_up(max(c, 1), 128)
    row_f32 = lanes * 4                       # one lane-padded f32 intermediate row
    row_in = lanes * in_itemsize              # one native-dtype input row in VMEM
    row_tgt = 128 * 4                         # (tile_n, 1) i32 is lane-padded in VMEM
    # live set per grid step: double-buffered inputs + ~6 f32-tile intermediates
    bytes_per_row = 2 * row_in + 2 * row_tgt + 6 * row_f32
    budget = 24 * 1024 * 1024                 # live-set budget (vmem_limit = 48 MiB)
    tile = budget // bytes_per_row
    tile = max(16, min(tile, 8192))           # big tiles amortize ~0.35us step cost
    tile = min(tile, _round_up(n, 16))        # don't tile coarser than needed
    return max(16, (tile // 16) * 16)         # multiple of 16 (bf16 sublane packing)


def trunc_cross_entropy_loss(logits, targets, *,
                             loss_trunc_thr=0.5, decay=0.1, ignore_index=-1,
                             tile_n=None):
    """logits: (N, C) float (native dtype), targets: (N,) int -> scalar float32."""
    n, c = logits.shape
    itemsize = jnp.dtype(logits.dtype).itemsize
    if tile_n is None:
        tile_n = _pick_tile_n(n, c, itemsize)
    tile_n = max(16, (int(tile_n) // 16) * 16)
    grid_n = -(-n // tile_n)

    targets_2d = targets.astype(jnp.int32).reshape(n, 1)   # cheap; no logits pad

    kernel = functools.partial(
        _trunc_ce_kernel,
        loss_trunc_thr=float(loss_trunc_thr),
        decay=float(decay),
        ignore_index=int(ignore_index),
        n_rows=int(n),
    )

    cost = pl.CostEstimate(
        flops=8 * n * c,
        transcendentals=n * (c + 1),
        bytes_accessed=n * c * itemsize + n * 4 + 2 * grid_n * 128 * 4,
    )

    loss_part, w0_part = pl.pallas_call(
        kernel,
        out_shape=(jax.ShapeDtypeStruct((grid_n, 1, 128), jnp.float32),
                   jax.ShapeDtypeStruct((grid_n, 1, 128), jnp.float32)),
        grid=(grid_n,),
        in_specs=[
            pl.BlockSpec((tile_n, c), lambda i: (i, 0)),   # logits tile (native dtype)
            pl.BlockSpec((tile_n, 1), lambda i: (i, 0)),   # targets tile
        ],
        out_specs=(
            pl.BlockSpec((1, 1, 128), lambda i: (i, 0, 0)),  # per-step loss partial
            pl.BlockSpec((1, 1, 128), lambda i: (i, 0, 0)),  # per-step w0 partial
        ),
        compiler_params=pltpu.CompilerParams(
            dimension_semantics=("parallel",),             # megacore-shardable on v7x
            vmem_limit_bytes=48 * 1024 * 1024,
        ),
        cost_estimate=cost,
    )(logits, targets_2d)

    # tiny (grid_n,) reductions + global normalizer finish in the wrapper
    loss_sum = jnp.sum(loss_part[:, 0, 0])
    w0_sum = jnp.sum(w0_part[:, 0, 0])
    return loss_sum / jnp.maximum(jnp.float32(1.0), w0_sum)


def _reference(logits, targets, thr=0.5, decay=0.1, ignore_index=-1):
    # Pure-JAX reference for a sanity check.
    logits = logits.astype(jnp.float32)
    w0 = (targets > ignore_index).astype(jnp.float32)
    normalizer = jnp.maximum(1.0, w0.sum())
    p = jax.nn.softmax(logits, axis=1)
    p_max = p[:, 1:].max(axis=1)
    log_sm = jax.nn.log_softmax(logits, axis=1)
    safe_t = jnp.clip(targets, 0, logits.shape[1] - 1)
    ce = -jnp.take_along_axis(log_sm, safe_t[:, None], axis=1)[:, 0]
    ce = jnp.where(targets > ignore_index, ce, 0.0)
    w = jnp.where((p_max > thr) & (targets == 0), decay, w0)
    return jnp.sum(ce * w / normalizer)


if __name__ == "__main__":
    key = jax.random.PRNGKey(0)
    n, c = 50, 8  # ragged vs tile_n=16 -> exercises partial last block + masking
    k1, k2 = jax.random.split(key)
    logits = jax.random.normal(k1, (n, c), dtype=jnp.float32) * 3.0
    targets = jax.random.randint(k2, (n,), -1, c, dtype=jnp.int32)
    # guarantee every branch is exercised: background, ignored, foreground
    targets = targets.at[0].set(0).at[1].set(-1).at[2].set(3)

    ref = _reference(logits, targets)

    # multi-step grid with a ragged (partial, unpadded) last logits block
    out = jax.block_until_ready(
        trunc_cross_entropy_loss(logits, targets, loss_trunc_thr=0.5, decay=0.1,
                                 ignore_index=-1, tile_n=16))
    assert jnp.allclose(out, ref, rtol=1e-5, atol=1e-5), (out, ref)

    # auto tile size (single partial block)
    out_auto = jax.block_until_ready(trunc_cross_entropy_loss(logits, targets))
    assert jnp.allclose(out_auto, ref, rtol=1e-5, atol=1e-5), (out_auto, ref)

    # bf16 path: native dtype fed straight to the kernel (no wrapper upcast / pad)
    logits_bf16 = logits.astype(jnp.bfloat16)
    out_bf16 = jax.block_until_ready(
        trunc_cross_entropy_loss(logits_bf16, targets, loss_trunc_thr=0.5,
                                 decay=0.1, ignore_index=-1, tile_n=16))
    ref_bf16 = _reference(logits_bf16.astype(jnp.float32), targets)
    assert jnp.allclose(out_bf16, ref_bf16, rtol=1e-4, atol=1e-4), (out_bf16, ref_bf16)

    print("KERNEL_OK")
</pallas_src>

<mosaic_0001>
module attributes {stable_mosaic.version = 11 : i64} {
  func.func @_trunc_ce_kernel(%arg0: i32, %arg1: memref<16x8xf32, #tpu.memory_space<vmem>>, %arg2: memref<16x1xi32, #tpu.memory_space<vmem>>, %arg3: memref<1x1x128xf32, #tpu.memory_space<vmem>>, %arg4: memref<1x1x128xf32, #tpu.memory_space<vmem>>) attributes {dimension_semantics = [#tpu.dimension_semantics<parallel>], iteration_bounds = array<i64: 4>, scalar_prefetch = 0 : i64, scratch_operands = 0 : i64, tpu.core_type = #tpu.core_type<tc>, window_params = [{transform_indices = @transform_0, window_bounds = array<i64: 16, 8>}, {transform_indices = @transform_1, window_bounds = array<i64: 16, 1>}, {transform_indices = @transform_2, window_bounds = array<i64: 1, 1, 128>}, {transform_indices = @transform_3, window_bounds = array<i64: 1, 1, 128>}]} {
    %c0 = arith.constant 0 : index
    %c0_0 = arith.constant 0 : index
    %0 = vector.load %arg1[%c0, %c0_0] : memref<16x8xf32, #tpu.memory_space<vmem>>, vector<16x8xf32>
    %c0_1 = arith.constant 0 : index
    %c0_2 = arith.constant 0 : index
    %1 = vector.load %arg2[%c0_1, %c0_2] : memref<16x1xi32, #tpu.memory_space<vmem>>, vector<16x1xi32>
    %2 = tpu.iota {dimensions = array<i32: 0>} : vector<16x1xi32>
    %c16_i32 = arith.constant 16 : i32
    %3 = arith.muli %arg0, %c16_i32 : i32
    %4 = vector.broadcast %3 : i32 to vector<16x1xi32>
    %5 = arith.addi %2, %4 : vector<16x1xi32>
    %c50_i32 = arith.constant 50 : i32
    %6 = vector.broadcast %c50_i32 : i32 to vector<16x1xi32>
    %7 = arith.cmpi slt, %5, %6 : vector<16x1xi32>
    %8 = tpu.iota {dimensions = array<i32: 1>} : vector<16x8xi32>
    %cst = arith.constant dense<0xFF800000> : vector<16xf32>
    %9 = vector.multi_reduction <maximumf>, %0, %cst [1] : vector<16x8xf32> to vector<16xf32>
    %10 = vector.shape_cast %9 : vector<16xf32> to vector<16x1xf32>
    %11 = vector.broadcast %10 : vector<16x1xf32> to vector<16x8xf32>
    %12 = arith.subf %0, %11 : vector<16x8xf32>
    %13 = math.exp %12 : vector<16x8xf32>
    %cst_3 = arith.constant dense<0.000000e+00> : vector<16xf32>
    %14 = vector.multi_reduction <add>, %13, %cst_3 [1] : vector<16x8xf32> to vector<16xf32>
    %15 = vector.shape_cast %14 : vector<16xf32> to vector<16x1xf32>
    %16 = vector.broadcast %1 : vector<16x1xi32> to vector<16x8xi32>
    %17 = arith.cmpi eq, %8, %16 : vector<16x8xi32>
    %cst_4 = arith.constant 0.000000e+00 : f32
    %18 = vector.broadcast %cst_4 : f32 to vector<16x8xf32>
    %19 = arith.select %17, %12, %18 : vector<16x8xi1>, vector<16x8xf32>
    %cst_5 = arith.constant dense<0.000000e+00> : vector<16xf32>
    %20 = vector.multi_reduction <add>, %19, %cst_5 [1] : vector<16x8xf32> to vector<16xf32>
    %21 = vector.shape_cast %20 : vector<16xf32> to vector<16x1xf32>
    %c-1_i32 = arith.constant -1 : i32
    %22 = vector.broadcast %c-1_i32 : i32 to vector<16x1xi32>
    %23 = arith.cmpi sgt, %1, %22 : vector<16x1xi32>
    %24 = arith.andi %7, %23 : vector<16x1xi1>
    %25 = math.log %15 : vector<16x1xf32>
    %26 = arith.subf %25, %21 : vector<16x1xf32>
    %cst_6 = arith.constant 0.000000e+00 : f32
    %27 = vector.broadcast %cst_6 : f32 to vector<16x1xf32>
    %28 = arith.select %24, %26, %27 : vector<16x1xi1>, vector<16x1xf32>
    %c1_i32 = arith.constant 1 : i32
    %29 = vector.broadcast %c1_i32 : i32 to vector<16x8xi32>
    %30 = arith.cmpi sge, %8, %29 : vector<16x8xi32>
    %cst_7 = arith.constant 0xFF800000 : f32
    %31 = vector.broadcast %cst_7 : f32 to vector<16x8xf32>
    %32 = arith.select %30, %0, %31 : vector<16x8xi1>, vector<16x8xf32>
    %cst_8 = arith.constant dense<0xFF800000> : vector<16xf32>
    %33 = vector.multi_reduction <maximumf>, %32, %cst_8 [1] : vector<16x8xf32> to vector<16xf32>
    %34 = vector.shape_cast %33 : vector<16xf32> to vector<16x1xf32>
    %35 = arith.subf %34, %10 : vector<16x1xf32>
    %36 = math.exp %35 : vector<16x1xf32>
    %cst_9 = arith.constant 5.000000e-01 : f32
    %37 = vector.broadcast %cst_9 : f32 to vector<16x1xf32>
    %38 = arith.mulf %37, %15 : vector<16x1xf32>
    %39 = arith.cmpf ogt, %36, %38 : vector<16x1xf32>
    %c0_i32 = arith.constant 0 : i32
    %40 = vector.broadcast %c0_i32 : i32 to vector<16x1xi32>
    %41 = arith.cmpi eq, %1, %40 : vector<16x1xi32>
    %42 = arith.andi %39, %41 : vector<16x1xi1>
    %43 = arith.andi %42, %7 : vector<16x1xi1>
    %44 = arith.extui %24 : vector<16x1xi1> to vector<16x1xi32>
    %45 = arith.sitofp %44 : vector<16x1xi32> to vector<16x1xf32>
    %cst_10 = arith.constant 1.000000e-01 : f32
    %46 = vector.broadcast %cst_10 : f32 to vector<16x1xf32>
    %47 = arith.select %43, %46, %45 : vector<16x1xi1>, vector<16x1xf32>
    %48 = arith.mulf %28, %47 : vector<16x1xf32>
    %49 = vector.shape_cast %48 : vector<16x1xf32> to vector<1x16x1xf32>
    %cst_11 = arith.constant dense<0.000000e+00> : vector<1xf32>
    %50 = vector.multi_reduction <add>, %49, %cst_11 [1, 2] : vector<1x16x1xf32> to vector<1xf32>
    %51 = vector.shape_cast %50 : vector<1xf32> to vector<1x1x1xf32>
    %52 = vector.extract %51[0, 0, 0] : f32 from vector<1x1x1xf32>
    %53 = vector.broadcast %52 : f32 to vector<1x1x128xf32>
    %c0_12 = arith.constant 0 : index
    %c0_13 = arith.constant 0 : index
    %c0_14 = arith.constant 0 : index
    %54 = vector.load %arg3[%c0_12, %c0_13, %c0_14] : memref<1x1x128xf32, #tpu.memory_space<vmem>>, vector<1x1x128xf32>
    tpu.vector_store %arg3[%c0_12, %c0_13, %c0_14], %53 {strides = array<i32>} : memref<1x1x128xf32, #tpu.memory_space<vmem>>, vector<1x1x128xf32>,
    %55 = vector.shape_cast %45 : vector<16x1xf32> to vector<1x16x1xf32>
    %cst_15 = arith.constant dense<0.000000e+00> : vector<1xf32>
    %56 = vector.multi_reduction <add>, %55, %cst_15 [1, 2] : vector<1x16x1xf32> to vector<1xf32>
    %57 = vector.shape_cast %56 : vector<1xf32> to vector<1x1x1xf32>
    %58 = vector.extract %57[0, 0, 0] : f32 from vector<1x1x1xf32>
    %59 = vector.broadcast %58 : f32 to vector<1x1x128xf32>
    %c0_16 = arith.constant 0 : index
    %c0_17 = arith.constant 0 : index
    %c0_18 = arith.constant 0 : index
    %60 = vector.load %arg4[%c0_16, %c0_17, %c0_18] : memref<1x1x128xf32, #tpu.memory_space<vmem>>, vector<1x1x128xf32>
    tpu.vector_store %arg4[%c0_16, %c0_17, %c0_18], %59 {strides = array<i32>} : memref<1x1x128xf32, #tpu.memory_space<vmem>>, vector<1x1x128xf32>,
    return
  }
  func.func @transform_0(%arg0: i32) -> (i32, i32) {
    %c0_i32 = arith.constant 0 : i32
    %c0_i32_0 = arith.constant 0 : i32
    return %arg0, %c0_i32 : i32, i32
  }
  func.func @transform_1(%arg0: i32) -> (i32, i32) {
    %c0_i32 = arith.constant 0 : i32
    %c0_i32_0 = arith.constant 0 : i32
    return %arg0, %c0_i32 : i32, i32
  }
  func.func @transform_2(%arg0: i32) -> (i32, i32, i32) {
    %c0_i32 = arith.constant 0 : i32
    %c0_i32_0 = arith.constant 0 : i32
    %c0_i32_1 = arith.constant 0 : i32
    return %arg0, %c0_i32, %c0_i32_0 : i32, i32, i32
  }
  func.func @transform_3(%arg0: i32) -> (i32, i32, i32) {
    %c0_i32 = arith.constant 0 : i32
    %c0_i32_0 = arith.constant 0 : i32
    %c0_i32_1 = arith.constant 0 : i32
    return %arg0, %c0_i32, %c0_i32_0 : i32, i32, i32
  }
}

</mosaic_0001>

<bundles_post_ra>
// kernel: tpu_custom_call.1
= control target key start
LH: loop header
LB: loop body
LE: loop exit
PB: predicated region body
PF: predicated region fallthrough
CT: control target
= control target key end

     0   :  { %9 = vsyncpa [#allocation3], 0  ;;  %s865_s0 = inlined_call_operand.vmem [shape: f32[50,8], index: 0, kind: input, shape index: {}]   ;;  %s866_s1 = inlined_call_operand.vmem [shape: s32[50,1], index: 1, kind: input, shape index: {}]   ;;  %s867_s2 = inlined_call_operand.hbm [shape: f32[4,1,128], index: 2, kind: output, shape index: {0}]   ;;  %s868_s3 = inlined_call_operand.hbm [shape: f32[4,1,128], index: 3, kind: output, shape index: {1}]  }
   0x1   :  { %11 = vsyncpa [#allocation3 + $0x1], 0 }
   0x2   :  { %12 = vsyncpa [#allocation5], 0 }
   0x3   :  { %14 = vsyncpa [#allocation5 + $0x1], 0  ;;  %s686_s12 = smov 0   ;;  %s688_s13 = smov 0  }
   0x4   :  { %s690_s14 = smov 0   ;;  %s692_s15 = smov 0  }
   0x5 LB: > { %s707_s16 = sadd.s32 4294967295, %s660_s15   ;;  %s491_s17 = sadd.s32 4294967294, %s660_s15   ;;  %s660_s15 = sphi %s692_s15, %s878_s15   ;;  %s656_s14 = sphi %s690_s14, %s877_s14   ;;  %s652_s13 = sphi %s688_s13, %s876_s13   ;;  %s648_s12 = sphi %s686_s12, %s875_s12  }
   0x6   : > { %s711_s18 = sadd.s32 1, %s660_s15   ;;  %s79_s19 = sadd.s32 1, %s656_s14 }
   0x7   : > { %s76_s20 = ssub.s32 %s660_s15, %s711_s18  ;;  %p89_p0 = scmp.ne.s32.totalorder %s656_s14, %s652_s13 }
   0x8   : > { %p77_p1 = scmp.eq.s32.totalorder %s76_s20, 0  ;;  %p90_p2 = scmp.eq.s32.totalorder %s707_s16, 3 }
   0x9   : > { %p95_p3 = scmp.ne.s32.totalorder %s652_s13, %s648_s12  ;;  %p96_p4 = scmp.eq.s32.totalorder %s491_s17, 3 }
   0xa   : > { %s722_s21 = scalar_select %p77_p1, %s656_s14, %s79_s19  }
   0xb   : > { %p724_p5 = por %p90_p2, %p89_p0  ;;  %p728_p6 = por %p96_p4, %p95_p3 }
   0xc   : > { %p494_p7 = scmp.ge.s32.totalorder %s660_s15, 1  ;;  %p174_p8 = scmp.lt.s32.totalorder %s660_s15, 5 }
   0xe   : > { %p175_p9 = pnand %p494_p7, %p174_p8 }
   0xf   : > { %s495_s24 = sshll.u32 (!%p175_p9), %s707_s16, 1  ;;  %s756_s5 = sshll.u32 (!%p175_p9), %s707_s16, 4 }
  0x10   : > { %178 = sbr.rel (%p175_p9) target bundleno = 587 (0x24b), region = 28  ;;  %p219_p10 = scmp.lt.s32.totalorder (!%p175_p9), %s495_s24, 6 }
  0x11   : > { %s788_s6 = sand.u32 (!%p175_p9), 1, %s652_s13   ;;  %s798_s17 = scalar_lea.hbm (!%p175_p9), %s867_s2, %s756_s5 }
  0x12   : > { %s207_s7 = scalar_lea.vmem (!%p175_p9), [#allocation2], %s788_s6  ;;  %s213_s9 = scalar_lea.vmem (!%p175_p9), [#allocation4], %s788_s6 }
  0x13   : > { %s383_s8 = sshll.u32 (!%p175_p9), %s207_s7, 4  ;;  %s396_s10 = sshll.u32 (!%p175_p9), %s213_s9, 4  ;;  %s800_s8 = int_to_ptr.vmem [resolvable:$true] %s383_s8  ;;  %s802_s10 = int_to_ptr.vmem [resolvable:$true] %s396_s10 }
  0x14   : > { %s367_s20 = scalar_lea.sflag (!%p175_p9), [#allocation3], %s788_s6 }
  0x15   : > { %v246_v0 = vlaneseq  ;;  %v662_v1 = vmov 0   ;;  %s880_s24 = smov (!%p219_p10, %s495_s24), 6  ;;  %vm257_vm0 = vcmask 64512   ;;  %v250_v30 = vstv %s756_s5 }
  0x16   : > { %556 = vset.pattern.permute.xlu1 %v662_v1  ;;  %557 = vset.pattern.permute.xlu0 %v662_v1  ;;  %s496_s25 = sshll.u32 %s880_s24, 3  ;;  %v663_v36 = vmov 0.0   ;;  %vm337_vm10 = vcmask 7168   ;;  %s570_s24 = scalar_lea.vmem %s800_s8, 16 }
  0x17   : > { %v256_v2 = vand.u32 127, %v246_v0  ;;  %s236_s28 = scalar_lea.vmem %s866_s1, %s496_s25  ;;  %s222_s4 = scalar_lea.vmem %s865_s0, %s496_s25  ;;  %v247_v29 = vshrl.u32 %v246_v0, 7 }
  0x18   : > { %v741_v3 = vld [vmem:[%s236_s28] sm:$0xff]  ;;  %v243_v6 = vld [vmem:[%s222_s4 + $0x8] sm:$0xff]  ;;  %p571_p11 = scmp.ne.s32.totalorder %s800_s8, %s570_s24  ;;  %s664_s25 = smov [#allocation2]  }
  0x19   : > { %v242_v4 = vld [vmem:[%s222_s4] sm:$0xff]  ;;  %277 = vperm.xlu1 %556, %v741_v3   ;;  %vm304_vm1 = vcmp.ge.s32.totalorder %v256_v2, 1  ;;  %v745_v7 = vld [vmem:[%s236_s28 + $0x8] sm:$0xff]  ;;  %v261_v8 = vsel %vm257_vm0, %v243_v6, -inf  ;;  %v248_v31 = vadd.s32 8, %v247_v29  ;;  %v251_v32 = vadd.s32 %v250_v30, %v247_v29  ;;  %s574_s26 = sshll.u32 %s664_s25, 4  ;;  %s575_s26 = int_to_ptr.vmem [resolvable:$false] %s574_s26 }
  0x1a   : > { %v258_v5 = vsel %vm257_vm0, %v242_v4, -inf  ;;  %v305_v9 = vsel %vm304_vm1, %v242_v4, -inf  ;;  %v306_v11 = vsel %vm304_vm1, %v243_v6, -inf  ;;  %vm292_vm4 = vcmp.gt.s32.totalorder %v741_v3, 4294967295  ;;  %p572_p12 = pnand %p571_p11, %p724_p5  ;;  %s576_s27 = scalar_lea.vmem %s575_s26, 32 }
  0x1b   : > { %259 = vmax.xlane.f32.xlu0 %v258_v5  ;;  %v307_v10 = vsel %vm257_vm0, %v305_v9, -inf  ;;  %v310_v12 = vsel %vm257_vm0, %v306_v11, -inf  ;;  %v252_v33 = vadd.s32 %v250_v30, %v248_v31  ;;  %vm253_vm5 = vcmp.lt.s32.totalorder %v251_v32, 50  ;;  %p577_p0 = scmp.lt.s32.totalorder %s800_s8, %s575_s26  ;;  %p578_p1 = scmp.lt.s32.totalorder %s576_s27, %s570_s24 }
  0x1c   : > { %vm293_vm6 = vcmp.gt.s32.totalorder %v745_v7, 4294967295  ;;  %vm762_vm8 = vmand %vm253_vm5, %vm292_vm4  ;;  %vm323_vm11 = vcmp.eq.s32.totalorder %v741_v3, 0  ;;  %vm324_vm14 = vcmp.eq.s32.totalorder %v745_v7, 0  ;;  %p573_p13 = pneg %p572_p12 }
  0x1d   : > { %280 = vperm.xlu1 %556, %v745_v7   ;;  %vm254_vm7 = vcmp.lt.s32.totalorder %v252_v33, 50  ;;  %v500_v37 = vsel %vm762_vm8, 1.0, %v663_v36  ;;  %p579_p2 = por %p578_p1, %p577_p0 }
  0x1e   : > { %vm767_vm9 = vmand %vm254_vm7, %vm293_vm6  ;;  %v352_v39 = vsel %vm337_vm10, %v500_v37, 0.0 }
  0x1f   : > { %262 = vmax.xlane.f32.xlu0 %v261_v8  ;;  %v501_v38 = vsel %vm767_vm9, 1.0, %v663_v36  ;;  %p580_p3 = pnand %p579_p2, %p573_p13 }
  0x20   : > { %v353_v40 = vsel %vm337_vm10, %v501_v38, 0.0 }
  0x21   : > { %v354_v41 = vadd.f32 %v353_v40, %v352_v39 }
  0x23   : > { %308 = vmax.xlane.f32.xlu0 %v307_v10 }
  0x41   : > { %311 = vmax.xlane.f32.xlu1 %v310_v12 }
  0x94   : > { %v278_v19 = vpop.permute.xlu1 %277 }
  0x95   : > { %vm282_vm2 = vcmp.eq.s32.totalorder %v256_v2, %v278_v19 }
  0x98   : > { %v281_v23 = vpop.permute.xlu1 %280 }
  0x99   : > { %vm283_vm3 = vcmp.eq.s32.totalorder %v256_v2, %v281_v23 }
  0xa4   : > { %v260_v13 = vpop.xlane.xlu0 %259 }
  0xa5   : > { %v264_v14 = vsub.f32 %v242_v4, %v260_v13 }
  0xa7   : > { %v266_v15 = vmul.f32 1.442695, %v264_v14  ;;  %v284_v25 = vsel %vm282_vm2, %v264_v14, 0.0 }
  0xa8   : > { %v263_v16 = vpop.xlane.xlu0 %262  ;;  %v286_v26 = vsel %vm257_vm0, %v284_v25, 0.0 }
  0xa9   : > { %558 = vpow2.f32 %v266_v15  ;;  %v265_v17 = vsub.f32 %v243_v6, %v263_v16 }
  0xab   : > { %v268_v18 = vmul.f32 1.442695, %v265_v17  ;;  %v285_v27 = vsel %vm283_vm3, %v265_v17, 0.0 }
  0xac   : > { %v289_v28 = vsel %vm257_vm0, %v285_v27, 0.0  ;;  %v309_v42 = vpop.xlane.xlu0 %308 }
  0xad   : > { %560 = vpow2.f32 %v268_v18  ;;  %v313_v43 = vsub.f32 %v309_v42, %v260_v13 }
  0xaf   : > { %v315_v45 = vmul.f32 1.442695, %v313_v43 }
  0xb1   : > { %562 = vpow2.f32 %v315_v45 }
  0xb6   : > { %v559_v20 = vpop.eup %558 }
  0xb7   : > { %v270_v21 = vsel %vm257_vm0, %v559_v20, 0.0 }
  0xb8   : > { %271 = vadd.xlane.f32.xlu0 %v270_v21 }
  0xba   : > { %v561_v22 = vpop.eup %560 }
  0xbb   : > { %v273_v24 = vsel %vm257_vm0, %v561_v22, 0.0 }
  0xbc   : > { %274 = vadd.xlane.f32.xlu0 %v273_v24 }
  0xbe   : > { %v563_v50 = vpop.eup %562 }
  0xc0   : > { %287 = vadd.xlane.f32.xlu0 %v286_v26 }
  0xc4   : > { %290 = vadd.xlane.f32.xlu0 %v289_v28 }
  0xca   : > { %v312_v44 = vpop.xlane.xlu1 %311 }
  0xcb   : > { %v314_v46 = vsub.f32 %v312_v44, %v263_v16 }
  0xcd   : > { %v317_v47 = vmul.f32 1.442695, %v314_v46 }
  0xcf   : > { %564 = vpow2.f32 %v317_v47 }
  0xdc   : > { %v565_v53 = vpop.eup %564 }
 0x141   : > { %v272_v48 = vpop.xlane.xlu0 %271 }
 0x142   : > { %566 = vlog2.f32 %v272_v48  ;;  %v319_v49 = vmul.f32 0.5, %v272_v48 }
 0x144   : > { %vm321_vm12 = vcmp.gt.f32.partialorder %v563_v50, %v319_v49 }
 0x145   : > { %vm325_vm13 = vmand %vm321_vm12, %vm323_vm11  ;;  %v275_v51 = vpop.xlane.xlu0 %274 }
 0x146   : > { %568 = vlog2.f32 %v275_v51  ;;  %v320_v52 = vmul.f32 0.5, %v275_v51  ;;  %vm327_vm15 = vmand %vm325_vm13, %vm253_vm5 }
 0x147   : > { %v333_v54 = vsel %vm327_vm15, 0.1, %v500_v37 }
 0x148   : > { %vm322_vm0 = vcmp.gt.f32.partialorder %v565_v53, %v320_v52 }
 0x149   : > { %vm326_vm1 = vmand %vm322_vm0, %vm324_vm14  ;;  %v288_v57 = vpop.xlane.xlu0 %287 }
 0x14a   : > { %vm328_vm2 = vmand %vm326_vm1, %vm254_vm7 }
 0x14b   : > { %v334_v55 = vsel %vm328_vm2, 0.1, %v501_v38 }
 0x14d   : > { %v291_v0 = vpop.xlane.xlu0 %290 }
 0x14f   : > { %v567_v56 = vpop.eup %566 }
 0x150   : > { %v297_v58 = vmul.f32 0.6931472, %v567_v56 }
 0x152   : > { %v300_v59 = vsub.f32 %v297_v58, %v288_v57 }
 0x153   : > { %v569_v60 = vpop.eup %568 }
 0x154   : > { %v302_v61 = vsel %vm762_vm8, %v300_v59, 0.0  ;;  %v299_v62 = vmul.f32 0.6931472, %v569_v60 }
 0x155   : > { %v335_v63 = vmul.f32 %v333_v54, %v302_v61 }
 0x156   : > { %v301_v1 = vsub.f32 %v299_v62, %v291_v0 }
 0x157   : > { %v338_v4 = vsel %vm337_vm10, %v335_v63, 0.0 }
 0x158   : > { %v303_v2 = vsel %vm767_vm9, %v301_v1, 0.0 }
 0x159   : > { %v336_v3 = vmul.f32 %v334_v55, %v303_v2 }
 0x15b   : > { %v339_v5 = vsel %vm337_vm10, %v336_v3, 0.0 }
 0x15c   : > { %v340_v6 = vadd.f32 %v339_v5, %v338_v4 }
 0x15e   : > { %341 = vadd.xlane.f32.xlu0 %v340_v6 }
 0x162   : > { %355 = vadd.xlane.f32.xlu0 %v354_v41 }
 0x1e7   : > { %v342_v7 = vpop.xlane.xlu0 %341 }
 0x1e8   : > { %v343_v8 = vrot.slane %v342_v7, 4 }
 0x1ea   : > { %v344_v9 = vadd.f32 %v343_v8, %v342_v7 }
 0x1eb   : > { %v356_v10 = vpop.xlane.xlu0 %355 }
 0x1ec   : > { %v345_v11 = vrot.slane %v344_v9, 2  ;;  %v357_v12 = vrot.slane %v356_v10, 4 }
 0x1ee   : > { %v358_v13 = vadd.f32 %v357_v12, %v356_v10  ;;  %v346_v14 = vadd.f32 %v345_v11, %v344_v9 }
 0x1f0   : > { %v359_v15 = vrot.slane %v358_v13, 2  ;;  %v347_v16 = vrot.slane %v346_v14, 1 }
 0x1f2   : > { %v360_v17 = vadd.f32 %v359_v15, %v358_v13  ;;  %v348_v18 = vadd.f32 %v347_v16, %v346_v14 }
 0x1f4   : > { %506 = vpush %v348_v18  ;;  %v361_v19 = vrot.slane %v360_v17, 1 }
 0x1f6   : > { %v362_v20 = vadd.f32 %v361_v19, %v360_v17 }
 0x1f8   : > { %508 = vpush %v362_v20 }
 0x225   : > { %s507_s19 = spop %506 }
 0x226   : > { %v350_v21 = vstv %s507_s19 }
 0x227   : > { %351 = vst [vmem:[%s207_s7] sm:$0x1] %v350_v21 }
 0x228   : > { %583 = shalt.err (!%p580_p3)
}
 0x229   : > { %s584_s28 = scalar_lea.hbm %s798_s17, 16  ;;  %s588_s4 = scalar_lea.hbm %s867_s2, 64 }
 0x22a   : > { %p585_p4 = scmp.ne.s32.totalorder %s798_s17, %s584_s28  ;;  %p589_p9 = scmp.lt.s32.totalorder %s798_s17, %s867_s2 }
 0x22b   : > { %p590_p10 = scmp.lt.s32.totalorder %s588_s4, %s584_s28 }
 0x22c   : > { %p586_p7 = pnand %p585_p4, %p724_p5 }
 0x22d   : > { %p591_p11 = por %p590_p10, %p589_p9 }
 0x22e   : > { %p587_p8 = pneg %p586_p7 }
 0x230   : > { %p592_p12 = pnand %p591_p11, %p587_p8 }
 0x232   : > { %595 = shalt.err (!%p592_p12)
}
 0x233   : > { %510 = dma.vmem_to_hbm [thread:$0]  (%p724_p5), %s800_s8, 16, %s798_s17, %s367_s20  }
 0x234   : > { %s509_s16 = spop %508  ;;  %s394_s25 = scalar_lea.hbm %s868_s3, %s756_s5 }
 0x235   : > { %v364_v22 = vstv %s509_s16  ;;  %s371_s26 = scalar_lea.sflag [#allocation5], %s788_s6  ;;  %s596_s27 = scalar_lea.vmem %s802_s10, 16 }
 0x236   : > { %365 = vst [vmem:[%s213_s9] sm:$0x1] %v364_v22  ;;  %p597_p13 = scmp.ne.s32.totalorder %s802_s10, %s596_s27  ;;  %s665_s28 = smov [#allocation4]  }
 0x237   : > { %s600_s29 = sshll.u32 %s665_s28, 4  ;;  %s601_s29 = int_to_ptr.vmem [resolvable:$false] %s600_s29 }
 0x238   : > { %p598_p0 = pnand %p597_p13, %p724_p5  ;;  %s602_s30 = scalar_lea.vmem %s601_s29, 32 }
 0x239   : > { %p603_p2 = scmp.lt.s32.totalorder %s802_s10, %s601_s29  ;;  %p604_p3 = scmp.lt.s32.totalorder %s602_s30, %s596_s27 }
 0x23a   : > { %p599_p1 = pneg %p598_p0 }
 0x23b   : > { %p605_p4 = por %p604_p3, %p603_p2 }
 0x23d   : > { %p606_p7 = pnand %p605_p4, %p599_p1 }
 0x23f   : > { %609 = shalt.err (!%p606_p7)
}
 0x240   : > { %s610_s8 = scalar_lea.hbm %s394_s25, 16  ;;  %s614_s9 = scalar_lea.hbm %s868_s3, 64 }
 0x241   : > { %p611_p8 = scmp.ne.s32.totalorder %s394_s25, %s610_s8  ;;  %p615_p11 = scmp.lt.s32.totalorder %s394_s25, %s868_s3 }
 0x242   : > { %p616_p12 = scmp.lt.s32.totalorder %s614_s9, %s610_s8 }
 0x243   : > { %p612_p9 = pnand %p611_p8, %p724_p5 }
 0x244   : > { %p617_p13 = por %p616_p12, %p615_p11 }
 0x245   : > { %p613_p10 = pneg %p612_p9 }
 0x247   : > { %p618_p0 = pnand %p617_p13, %p613_p10 }
 0x249   : > { %621 = shalt.err (!%p618_p0)
}
 0x24a   : > { %511 = dma.vmem_to_hbm [thread:$0]  (%p724_p5), %s802_s10, 16, %s394_s25, %s371_s26  }
 0x24b PF: > { %p521_p1 = scmp.ge.s32.totalorder %s660_s15, 2  ;;  %s408_s4 = sand.u32 1, %s648_s12  }
 0x24c   : > { %s409_s7 = scalar_lea.sflag [#allocation3], %s408_s4 }
 0x24d   : > { %p515_p2 = pnand %p521_p1, %p728_p6 }
 0x24f   : > { %p516_p3 = pneg %p515_p2 }
 0x251   : > { %639 = dma.done.wait (%p516_p3), %s409_s7, 16  }
 0x252   : > { %641 = vsyncadd (%p516_p3), %s409_s7, 4294967280  ;;  %s417_s11 = scalar_lea.sflag [#allocation5], %s408_s4 }
 0x253   : > { %643 = dma.done.wait (%p516_p3), %s417_s11, 16  }
 0x254   : > { %645 = vsyncadd (%p516_p3), %s417_s11, 4294967280  ;;  %p17_p5 = scmp.ge.s32.totalorder %s711_s18, 6   ;;  %s875_s12 = smov %s652_s13 }
 0x255   : > { %s876_s13 = smov %s656_s14  ;;  %s877_s14 = smov %s722_s21 }
 0x256   : > { %s878_s15 = smov %s711_s18  ;;  %19 = sbr.rel (!%p17_p5) target bundleno = 5 (0x5), region = 83 }
 0x25b   :  { %421 = vsyncpa [#allocation3], 1 }
 0x25c   :  { %423 = vsyncpa [#allocation3 + $0x1], 1 }
 0x25d   :  { %424 = vsyncpa [#allocation5], 1 }
 0x25e   :  { %426 = vsyncpa [#allocation5 + $0x1], 1 }

</bundles_post_ra>
